<compile_context>
chip_gen: v7x
topology: tpu7x:2x2x1
jax: 0.10.0
libtpu: 0.0.40
codegen_flags: <defaults>
</compile_context>

<pallas_src>
import math

import jax
import jax.numpy as jnp
from jax.experimental import pallas as pl
from jax.experimental.pallas import tpu as pltpu

_NEG_FOUR_PI_SQ = -4.0 * math.pi ** 2

# -4*pi^2 * cos(2*pi*u) ~= sum_k POLY[k] * (u^2)^k   for |u| <= 0.5,
# with POLY[k] = -4*pi^2 * (-1)^k * (2*pi)^(2k) / (2k)!   (k = 0..7).
# Truncation error of cos is bounded by pi^16/16! ~= 4.3e-6.
_POLY = tuple(
    _NEG_FOUR_PI_SQ * ((-1.0) ** k) * (2.0 * math.pi) ** (2 * k) / math.factorial(2 * k)
    for k in range(8)
)

_TARGET_TILE_BYTES = 4 << 20   # ~4 MiB input tile
_MIN_TILE_BYTES = 1 << 20      # floor when balancing across TensorCores
_VMEM_LIMIT_BYTES = 32 << 20   # in+out double-buffered 4 MiB tiles = 16 MiB


def _cos_der2_kernel(x_ref, o_ref):
    x = x_ref[...].astype(jnp.float32)
    # cos(2*pi*x) is 1-periodic in x: reduce to u = x - round(x) in [-0.5, 0.5].
    u = x - jnp.floor(x + 0.5)
    t = u * u
    acc = jnp.float32(_POLY[7])
    for c in _POLY[6::-1]:                       # Horner, scale already folded in
        acc = acc * t + jnp.float32(c)
    o_ref[...] = acc.astype(o_ref.dtype)


def _num_tensorcores() -> int:
    """TensorCores per chip: 2 on v7x, 1 on v5e/v6e (defaults to 1 if unknown)."""
    try:
        kind = jax.devices()[0].device_kind.lower()
    except Exception:
        return 1
    return 2 if "v7" in kind else 1


def _round_down(v: int, m: int) -> int:
    return (v // m) * m


def _round_up(v: int, m: int) -> int:
    return -(-v // m) * m


def _as_2d(x: jax.Array) -> jax.Array:
    """Zero-copy reshape of x to a lane-friendly 2-D slab (rows, cols)."""
    n = x.size
    if n % 128 == 0:
        # Fully flatten; pick the widest lane count that divides n exactly.
        for lanes in (512, 256, 128):
            if n % lanes == 0:
                return jnp.reshape(x, (n // lanes, lanes))
    # n not a multiple of 128: collapse leading dims, keep trailing dim
    # (still zero-copy).  Non-128 lane widths just mean masked stores; there
    # is still exactly one HBM pass (no pad/slice).
    if x.ndim >= 2:
        return jnp.reshape(x, (n // x.shape[-1], x.shape[-1]))
    return jnp.reshape(x, (1, n))


def cos_der2(x: jax.Array) -> jax.Array:
    """Pallas implementation of CosDer2.forward: -4*pi^2 * cos(2*pi*x)."""
    orig_shape = x.shape
    if x.size == 0:
        return x

    x2d = _as_2d(x)
    rows, cols = x2d.shape
    itemsize = jnp.dtype(x.dtype).itemsize
    sub = max(8, 32 // itemsize)          # sublane multiple: 8 f32, 16 bf16, 32 int8

    # Lane (column) blocking: full width when clean or small; otherwise
    # 2048-lane blocks with a masked ragged tail.
    if cols % 128 == 0 or cols <= 4096:
        block_c = cols
    else:
        block_c = 2048

    # Row blocking toward ~4 MiB input tiles, rounded to the sublane multiple.
    bytes_per_row = max(1, block_c) * itemsize
    target_rows = max(sub, _round_down(_TARGET_TILE_BYTES // bytes_per_row, sub))
    block_r = rows if rows <= target_rows else target_rows

    # v7x megacore: keep both TensorCores fed with several (near-)equal blocks,
    # but never shrink a tile below ~1 MiB.  Single-TC chips keep the full tile.
    cores = _num_tensorcores()
    if cores > 1:
        min_rows = max(sub, _round_down(_MIN_TILE_BYTES // bytes_per_row, sub))
        balanced = _round_up(-(-rows // (4 * cores)), sub)
        if balanced >= min_rows:
            block_r = min(block_r, balanced)

    grid = (pl.cdiv(rows, block_r), pl.cdiv(cols, block_c))

    out2d = pl.pallas_call(
        _cos_der2_kernel,
        out_shape=jax.ShapeDtypeStruct((rows, cols), x.dtype),
        grid_spec=pltpu.PrefetchScalarGridSpec(
            num_scalar_prefetch=0,
            grid=grid,
            in_specs=[pl.BlockSpec((block_r, block_c), lambda i, j: (i, j))],
            out_specs=pl.BlockSpec((block_r, block_c), lambda i, j: (i, j)),
        ),
        compiler_params=pltpu.CompilerParams(
            dimension_semantics=("parallel", "parallel"),
            vmem_limit_bytes=_VMEM_LIMIT_BYTES,
        ),
    )(x2d)

    return jnp.reshape(out2d, orig_shape)


if __name__ == "__main__":
    key = jax.random.PRNGKey(0)

    # NCHW-style input consistent with a conv/activation-derivative use.
    x = jax.random.normal(key, (2, 4, 16, 16), dtype=jnp.float32)
    y = jax.block_until_ready(cos_der2(x))
    ref = -4.0 * math.pi ** 2 * jnp.cos(2.0 * math.pi * x)
    assert y.shape == x.shape and y.dtype == x.dtype
    assert jnp.allclose(y, ref, rtol=1e-4, atol=1e-3), "mismatch vs reference"

    # Ragged shape (size not a multiple of 128) exercises the no-pad path.
    x2 = jax.random.normal(jax.random.PRNGKey(1), (2, 7, 50), dtype=jnp.float32)
    y2 = jax.block_until_ready(cos_der2(x2))
    ref2 = -4.0 * math.pi ** 2 * jnp.cos(2.0 * math.pi * x2)
    assert y2.shape == x2.shape and y2.dtype == x2.dtype
    assert jnp.allclose(y2, ref2, rtol=1e-4, atol=1e-3), "mismatch vs reference (ragged)"

    print("KERNEL_OK")
</pallas_src>

<mosaic_0001>
module attributes {stable_mosaic.version = 11 : i64} {
  func.func @_cos_der2_kernel(%arg0: i32, %arg1: i32, %arg2: memref<4x512xf32, #tpu.memory_space<vmem>>, %arg3: memref<4x512xf32, #tpu.memory_space<vmem>>) attributes {dimension_semantics = [#tpu.dimension_semantics<parallel>, #tpu.dimension_semantics<parallel>], iteration_bounds = array<i64: 1, 1>, scalar_prefetch = 0 : i64, scratch_operands = 0 : i64, tpu.core_type = #tpu.core_type<tc>, window_params = [{transform_indices = @transform_0, window_bounds = array<i64: 4, 512>}, {transform_indices = @transform_1, window_bounds = array<i64: 4, 512>}]} {
    %c0 = arith.constant 0 : index
    %c0_0 = arith.constant 0 : index
    %0 = vector.load %arg2[%c0, %c0_0] : memref<4x512xf32, #tpu.memory_space<vmem>>, vector<4x512xf32>
    %cst = arith.constant 5.000000e-01 : f32
    %1 = vector.broadcast %cst : f32 to vector<4x512xf32>
    %2 = arith.addf %0, %1 : vector<4x512xf32>
    %3 = math.floor %2 : vector<4x512xf32>
    %4 = arith.subf %0, %3 : vector<4x512xf32>
    %5 = arith.mulf %4, %4 : vector<4x512xf32>
    %cst_1 = arith.constant 67.6814346 : f32
    %6 = vector.broadcast %cst_1 : f32 to vector<4x512xf32>
    %7 = arith.mulf %6, %5 : vector<4x512xf32>
    %cst_2 = arith.constant -312.019104 : f32
    %8 = vector.broadcast %cst_2 : f32 to vector<4x512xf32>
    %9 = arith.addf %7, %8 : vector<4x512xf32>
    %10 = arith.mulf %9, %5 : vector<4x512xf32>
    %cst_3 = arith.constant 1043.26685 : f32
    %11 = vector.broadcast %cst_3 : f32 to vector<4x512xf32>
    %12 = arith.addf %10, %11 : vector<4x512xf32>
    %13 = arith.mulf %12, %5 : vector<4x512xf32>
    %cst_4 = arith.constant -2378.36304 : f32
    %14 = vector.broadcast %cst_4 : f32 to vector<4x512xf32>
    %15 = arith.addf %13, %14 : vector<4x512xf32>
    %16 = arith.mulf %15, %5 : vector<4x512xf32>
    %cst_5 = arith.constant 3.373700e+03 : f32
    %17 = vector.broadcast %cst_5 : f32 to vector<4x512xf32>
    %18 = arith.addf %16, %17 : vector<4x512xf32>
    %19 = arith.mulf %18, %5 : vector<4x512xf32>
    %cst_6 = arith.constant -2563.70459 : f32
    %20 = vector.broadcast %cst_6 : f32 to vector<4x512xf32>
    %21 = arith.addf %19, %20 : vector<4x512xf32>
    %22 = arith.mulf %21, %5 : vector<4x512xf32>
    %cst_7 = arith.constant 779.272705 : f32
    %23 = vector.broadcast %cst_7 : f32 to vector<4x512xf32>
    %24 = arith.addf %22, %23 : vector<4x512xf32>
    %25 = arith.mulf %24, %5 : vector<4x512xf32>
    %cst_8 = arith.constant -39.4784164 : f32
    %26 = vector.broadcast %cst_8 : f32 to vector<4x512xf32>
    %27 = arith.addf %25, %26 : vector<4x512xf32>
    %c0_9 = arith.constant 0 : index
    %c0_10 = arith.constant 0 : index
    %28 = vector.load %arg3[%c0_9, %c0_10] : memref<4x512xf32, #tpu.memory_space<vmem>>, vector<4x512xf32>
    tpu.vector_store %arg3[%c0_9, %c0_10], %27 {strides = array<i32>} : memref<4x512xf32, #tpu.memory_space<vmem>>, vector<4x512xf32>,
    return
  }
  func.func @transform_0(%arg0: i32, %arg1: i32) -> (i32, i32) {
    %c0_i32 = arith.constant 0 : i32
    return %arg0, %arg1 : i32, i32
  }
  func.func @transform_1(%arg0: i32, %arg1: i32) -> (i32, i32) {
    %c0_i32 = arith.constant 0 : i32
    return %arg0, %arg1 : i32, i32
  }
}

</mosaic_0001>

<bundles_post_ra>
// kernel: tpu_custom_call.1
= control target key start
LH: loop header
LB: loop body
LE: loop exit
PB: predicated region body
PF: predicated region fallthrough
CT: control target
= control target key end

     0   :  { %6 = vsyncpa [#allocation3], 0  ;;  %s162_s0 = inlined_call_operand.hbm [shape: f32[4,512], index: 0, kind: input, shape index: {}]   ;;  %s163_s1 = inlined_call_operand.hbm [shape: f32[4,512], index: 1, kind: output, shape index: {}]  }
   0x1   :  { %7 = vsyncpa [#allocation4], 0  ;;  %s126_s6 = smov [#allocation2]   ;;  %s78_s10 = scalar_lea.hbm %s162_s0, 256 }
   0x2   :  { %s14_s7 = sshll.u32 %s126_s6, 4  ;;  %p79_p0 = scmp.ne.s32.totalorder %s162_s0, %s78_s10  ;;  %s15_s7 = int_to_ptr.vmem [resolvable:$true] %s14_s7 }
   0x3   :  { %p82_p1 = scmp.lt.u32.totalorder %s78_s10, %s162_s0 }
   0x5   :  { %p84_p2 = pnand %p82_p1, %p79_p0 }
   0x7   :  { %87 = shalt.err (!%p84_p2)
}
   0x8   :  { %s88_s15 = scalar_lea.vmem %s15_s7, 256  ;;  %p93_p4 = scmp.lt.s32.totalorder %s15_s7, %s15_s7 }
   0x9   :  { %p89_p3 = scmp.ne.s32.totalorder %s15_s7, %s88_s15  ;;  %p94_p5 = scmp.lt.s32.totalorder %s88_s15, %s88_s15 }
   0xb   :  { %p95_p6 = por %p94_p5, %p93_p4 }
   0xd   :  { %p96_p7 = pnand %p95_p6, %p89_p3 }
   0xf   :  { %99 = shalt.err (!%p96_p7)
}
  0x10   :  { %17 = dma.hbm_to_vmem [thread:$0]  %s162_s0, 256, %s15_s7, [#allocation3]  }
  0x11   :  { %122 = dma.done.wait [#allocation3], 256  }
  0x12   :  { %123 = vsyncadd [#allocation3], 4294967040  ;;  %v21_v0 = vld [vmem:[#allocation2] sm:$0xff]  ;;  %v22_v1 = vld [vmem:[#allocation2 + $0x8] sm:$0xff]  ;;  %s127_s0 = smov [#allocation5]  }
  0x13   :  { %v23_v2 = vadd.f32 0.5, %v21_v0  ;;  %v24_v3 = vadd.f32 0.5, %v22_v1  ;;  %s67_s18 = sshll.u32 %s127_s0, 4  ;;  %s68_s18 = int_to_ptr.vmem [resolvable:$true] %s67_s18 }
  0x14   :  { %s100_s19 = scalar_lea.vmem %s68_s18, 256  ;;  %p105_p9 = scmp.lt.s32.totalorder %s68_s18, %s68_s18 }
  0x15   :  { %v25_v4 = vfloor.f32 %v23_v2  ;;  %v26_v5 = vfloor.f32 %v24_v3  ;;  %p101_p8 = scmp.ne.s32.totalorder %s68_s18, %s100_s19  ;;  %p106_p10 = scmp.lt.s32.totalorder %s100_s19, %s100_s19 }
  0x17   :  { %v27_v6 = vsub.f32 %v21_v0, %v25_v4  ;;  %v28_v7 = vsub.f32 %v22_v1, %v26_v5  ;;  %p107_p11 = por %p106_p10, %p105_p9 }
  0x19   :  { %v29_v8 = vmul.f32 %v27_v6, %v27_v6  ;;  %v30_v9 = vmul.f32 %v28_v7, %v28_v7  ;;  %p108_p12 = pnand %p107_p11, %p101_p8 }
  0x1b   :  { %v31_v10 = vmul.f32 67.681435, %v29_v8  ;;  %v32_v11 = vmul.f32 67.681435, %v30_v9 }
  0x1d   :  { %v33_v12 = vadd.f32 -312.0191, %v31_v10  ;;  %v34_v13 = vadd.f32 -312.0191, %v32_v11 }
  0x1f   :  { %v35_v14 = vmul.f32 %v33_v12, %v29_v8  ;;  %v36_v15 = vmul.f32 %v34_v13, %v30_v9 }
  0x21   :  { %v37_v16 = vadd.f32 1043.2668, %v35_v14  ;;  %v38_v17 = vadd.f32 1043.2668, %v36_v15 }
  0x23   :  { %v39_v18 = vmul.f32 %v37_v16, %v29_v8  ;;  %v40_v19 = vmul.f32 %v38_v17, %v30_v9 }
  0x25   :  { %v41_v20 = vadd.f32 -2378.363, %v39_v18  ;;  %v42_v21 = vadd.f32 -2378.363, %v40_v19 }
  0x27   :  { %v43_v22 = vmul.f32 %v41_v20, %v29_v8  ;;  %v44_v23 = vmul.f32 %v42_v21, %v30_v9 }
  0x29   :  { %v45_v24 = vadd.f32 3373.7, %v43_v22  ;;  %v46_v25 = vadd.f32 3373.7, %v44_v23 }
  0x2b   :  { %v47_v26 = vmul.f32 %v45_v24, %v29_v8  ;;  %v48_v27 = vmul.f32 %v46_v25, %v30_v9 }
  0x2d   :  { %v49_v28 = vadd.f32 -2563.7046, %v47_v26  ;;  %v50_v29 = vadd.f32 -2563.7046, %v48_v27 }
  0x2f   :  { %v51_v30 = vmul.f32 %v49_v28, %v29_v8  ;;  %v52_v31 = vmul.f32 %v50_v29, %v30_v9 }
  0x31   :  { %v53_v32 = vadd.f32 779.2727, %v51_v30  ;;  %v54_v33 = vadd.f32 779.2727, %v52_v31 }
  0x33   :  { %v55_v34 = vmul.f32 %v53_v32, %v29_v8  ;;  %v56_v35 = vmul.f32 %v54_v33, %v30_v9 }
  0x35   :  { %v57_v36 = vadd.f32 -39.478416, %v55_v34  ;;  %v58_v37 = vadd.f32 -39.478416, %v56_v35 }
  0x37   :  { %59 = vst [vmem:[#allocation5] sm:$0xff] %v57_v36  ;;  %60 = vst [vmem:[#allocation5 + $0x8] sm:$0xff] %v58_v37 }
  0x38   :  { %111 = shalt.err (!%p108_p12)
}
  0x39   :  { %s112_s22 = scalar_lea.hbm %s163_s1, 256 }
  0x3a   :  { %p113_p13 = scmp.ne.s32.totalorder %s163_s1, %s112_s22  ;;  %p116_p0 = scmp.lt.u32.totalorder %s112_s22, %s163_s1 }
  0x3c   :  { %p118_p1 = pnand %p116_p0, %p113_p13 }
  0x3e   :  { %121 = shalt.err (!%p118_p1)
}
  0x3f   :  { %70 = dma.vmem_to_hbm [thread:$0]  %s68_s18, 256, %s163_s1, [#allocation4]  }
  0x40   :  { %124 = dma.done.wait [#allocation4], 256  }
  0x41   :  { %125 = vsyncadd [#allocation4], 4294967040 }
  0x42   :  { %74 = vsyncpa [#allocation3], 1 }
  0x43   :  { %75 = vsyncpa [#allocation4], 1 }

</bundles_post_ra>
